<compile_context>
chip_gen: v6e
topology: v6e:2x2x1
jax: 0.10.0
libtpu: 0.0.40
codegen_flags: <defaults>
</compile_context>

<pallas_src>
import jax
import jax.numpy as jnp
from jax import lax
from jax.experimental import pallas as pl
from jax.experimental.pallas import tpu as pltpu

_VMEM_LIMIT = 32 * 1024 * 1024  # per-step working set here is <5 MiB; safe on v5e/v6e/v7x


# ---------------------------------------------------------------------------
# Kernels
# ---------------------------------------------------------------------------
def _conv1x1_bn_silu_kernel(x_ref, w_ref, s_ref, b_ref, o_ref):
    # x_ref: (1, H, W, Cin) bf16 ; w_ref: (Cin, Cout) bf16 ; s_ref/b_ref: (1, Cout) f32
    _, H, W, Cin = x_ref.shape
    Cout = w_ref.shape[1]
    x = x_ref[...].reshape(H * W, Cin)
    y = jnp.dot(x, w_ref[...], preferred_element_type=jnp.float32)
    y = y * s_ref[...] + b_ref[...]          # folded BatchNorm (inference)
    y = y * jax.nn.sigmoid(y)                # SiLU (f32 epilogue)
    o_ref[...] = y.reshape(1, H, W, Cout).astype(o_ref.dtype)


def _make_conv3x3_s1_kernel(group_channels):
    """3x3 / stride 1 / pad 1 ConvBNSiLU fused with a channel-concat of its inputs.

    One input ref per concat group. Each group is zero-padded into a VMEM scratch,
    its 9 taps are gathered into a shared im2col buffer (H*W, 9*sum(Cg)), and ONE
    large-K MXU matmul produces the output (instead of 9 tiny-K matmuls).
    """
    num_groups = len(group_channels)

    def kernel(*refs):
        x_refs = refs[:num_groups]
        w_ref, s_ref, b_ref = refs[num_groups:num_groups + 3]
        o_ref = refs[num_groups + 3]
        pad_refs = refs[num_groups + 4:2 * num_groups + 4]
        col_ref = refs[2 * num_groups + 4]

        _, H, W, _ = x_refs[0].shape
        Cout = w_ref.shape[1]

        off = 0
        for g in range(num_groups):
            Cg = group_channels[g]
            pg = pad_refs[g]
            pg[...] = jnp.zeros(pg.shape, pg.dtype)            # zero border (in VMEM)
            pg[pl.ds(1, H), pl.ds(1, W), :] = x_refs[g][0]     # interior
            for di in range(3):
                for dj in range(3):
                    k = di * 3 + dj
                    slab = pg[pl.ds(di, H), pl.ds(dj, W), :]
                    col_ref[:, pl.ds(off + k * Cg, Cg)] = slab.reshape(H * W, Cg)
            off += 9 * Cg

        y = jnp.dot(col_ref[...], w_ref[...], preferred_element_type=jnp.float32)
        y = y * s_ref[...] + b_ref[...]
        y = y * jax.nn.sigmoid(y)
        o_ref[...] = y.reshape(1, H, W, Cout).astype(o_ref.dtype)

    return kernel


def _conv3x3_s2_kernel(xee_ref, xeo_ref, xoe_ref, xoo_ref, w_ref, s_ref, b_ref,
                       o_ref, pee, peo, poe, poo, col_ref):
    """3x3 / stride 2 / pad 1 ConvBNSiLU over even/odd row & column input phases."""
    _, Ho, Wo, C = xee_ref.shape
    Cout = w_ref.shape[1]
    phase_in = ((xee_ref, xeo_ref), (xoe_ref, xoo_ref))   # [row parity][col parity]
    phase_pad = ((pee, peo), (poe, poo))

    for rp in range(2):
        for cp in range(2):
            pp = phase_pad[rp][cp]
            pp[...] = jnp.zeros(pp.shape, pp.dtype)
            pp[pl.ds(1, Ho), pl.ds(1, Wo), :] = phase_in[rp][cp][0]

    # Output (oh, ow), tap (di, dj) reads input row 2*oh+di-1, col 2*ow+dj-1:
    #   parity is even iff d == 1; window start in the padded phase is 0 iff d == 0.
    for di in range(3):
        rp = 0 if di == 1 else 1
        r0 = 0 if di == 0 else 1
        for dj in range(3):
            cp = 0 if dj == 1 else 1
            c0 = 0 if dj == 0 else 1
            k = di * 3 + dj
            slab = phase_pad[rp][cp][pl.ds(r0, Ho), pl.ds(c0, Wo), :]
            col_ref[:, pl.ds(k * C, C)] = slab.reshape(Ho * Wo, C)

    y = jnp.dot(col_ref[...], w_ref[...], preferred_element_type=jnp.float32)
    y = y * s_ref[...] + b_ref[...]
    y = y * jax.nn.sigmoid(y)
    o_ref[...] = y.reshape(1, Ho, Wo, Cout).astype(o_ref.dtype)


# ---------------------------------------------------------------------------
# Layer wrappers
# ---------------------------------------------------------------------------
def conv1x1_bn_silu(x, w, scale, bias):
    N, H, W, Cin = x.shape
    Cout = w.shape[1]
    return pl.pallas_call(
        _conv1x1_bn_silu_kernel,
        out_shape=jax.ShapeDtypeStruct((N, H, W, Cout), jnp.bfloat16),
        grid=(N,),
        in_specs=[
            pl.BlockSpec((1, H, W, Cin), lambda n: (n, 0, 0, 0)),
            pl.BlockSpec((Cin, Cout), lambda n: (0, 0)),
            pl.BlockSpec((1, Cout), lambda n: (0, 0)),
            pl.BlockSpec((1, Cout), lambda n: (0, 0)),
        ],
        out_specs=pl.BlockSpec((1, H, W, Cout), lambda n: (n, 0, 0, 0)),
        compiler_params=pltpu.CompilerParams(
            dimension_semantics=("parallel",), vmem_limit_bytes=_VMEM_LIMIT),
    )(x, w.astype(jnp.bfloat16),
      scale.reshape(1, Cout).astype(jnp.float32),
      bias.reshape(1, Cout).astype(jnp.float32))


def conv3x3_s1_bn_silu(xs, w_hwio, scale, bias):
    """ConvBNSiLU(3x3, s=1, p=1) applied to the channel-concat of `xs` (concat fused)."""
    N, H, W, _ = xs[0].shape
    Cout = w_hwio.shape[-1]
    gch = tuple(int(x.shape[-1]) for x in xs)
    assert sum(gch) == w_hwio.shape[2]
    K = 9 * sum(gch)

    # Weight rows ordered (group, tap, cin) to match the kernel's im2col columns.
    w_parts, off = [], 0
    for c in gch:
        w_parts.append(w_hwio[:, :, off:off + c, :].reshape(9 * c, Cout))
        off += c
    w_cat = jnp.concatenate(w_parts, axis=0).astype(jnp.bfloat16)

    in_specs = [pl.BlockSpec((1, H, W, c), lambda n: (n, 0, 0, 0)) for c in gch]
    in_specs += [
        pl.BlockSpec((K, Cout), lambda n: (0, 0)),
        pl.BlockSpec((1, Cout), lambda n: (0, 0)),
        pl.BlockSpec((1, Cout), lambda n: (0, 0)),
    ]
    scratch = [pltpu.VMEM((H + 2, W + 2, c), jnp.bfloat16) for c in gch]
    scratch += [pltpu.VMEM((H * W, K), jnp.bfloat16)]

    grid_spec = pltpu.PrefetchScalarGridSpec(
        num_scalar_prefetch=0, grid=(N,), in_specs=in_specs,
        out_specs=pl.BlockSpec((1, H, W, Cout), lambda n: (n, 0, 0, 0)),
        scratch_shapes=scratch)

    return pl.pallas_call(
        _make_conv3x3_s1_kernel(gch),
        out_shape=jax.ShapeDtypeStruct((N, H, W, Cout), jnp.bfloat16),
        grid_spec=grid_spec,
        compiler_params=pltpu.CompilerParams(
            dimension_semantics=("parallel",), vmem_limit_bytes=_VMEM_LIMIT),
    )(*xs, w_cat,
      scale.reshape(1, Cout).astype(jnp.float32),
      bias.reshape(1, Cout).astype(jnp.float32))


def conv3x3_s2_bn_silu(x, w_hwio, scale, bias):
    """ConvBNSiLU(3x3, stride 2, pad 1)."""
    N, H2, W2, C = x.shape
    Ho, Wo = H2 // 2, W2 // 2
    Cout = w_hwio.shape[-1]
    w_flat = w_hwio.reshape(9 * C, Cout).astype(jnp.bfloat16)

    # Even/odd row & column phases (thin XLA glue on a small tensor) so the kernel
    # can gather all 9 stride-2 taps with plain, non-strided slices.
    xee = x[:, 0::2, 0::2, :]
    xeo = x[:, 0::2, 1::2, :]
    xoe = x[:, 1::2, 0::2, :]
    xoo = x[:, 1::2, 1::2, :]

    phase_spec = pl.BlockSpec((1, Ho, Wo, C), lambda n: (n, 0, 0, 0))
    in_specs = [phase_spec] * 4 + [
        pl.BlockSpec((9 * C, Cout), lambda n: (0, 0)),
        pl.BlockSpec((1, Cout), lambda n: (0, 0)),
        pl.BlockSpec((1, Cout), lambda n: (0, 0)),
    ]
    scratch = [pltpu.VMEM((Ho + 1, Wo + 1, C), jnp.bfloat16) for _ in range(4)]
    scratch += [pltpu.VMEM((Ho * Wo, 9 * C), jnp.bfloat16)]

    grid_spec = pltpu.PrefetchScalarGridSpec(
        num_scalar_prefetch=0, grid=(N,), in_specs=in_specs,
        out_specs=pl.BlockSpec((1, Ho, Wo, Cout), lambda n: (n, 0, 0, 0)),
        scratch_shapes=scratch)

    return pl.pallas_call(
        _conv3x3_s2_kernel,
        out_shape=jax.ShapeDtypeStruct((N, Ho, Wo, Cout), jnp.bfloat16),
        grid_spec=grid_spec,
        compiler_params=pltpu.CompilerParams(
            dimension_semantics=("parallel",), vmem_limit_bytes=_VMEM_LIMIT),
    )(xee, xeo, xoe, xoo, w_flat,
      scale.reshape(1, Cout).astype(jnp.float32),
      bias.reshape(1, Cout).astype(jnp.float32))


# ---------------------------------------------------------------------------
# PANet forward
# ---------------------------------------------------------------------------
def _up2_nearest(x):
    # nn.Upsample(scale_factor=2, mode='nearest') on NHWC (pure data movement glue).
    return jnp.repeat(jnp.repeat(x, 2, axis=1), 2, axis=2)


def panet_forward(features_nchw, params):
    x3, x4, x5 = features_nchw
    to_nhwc = lambda t: jnp.transpose(t, (0, 2, 3, 1)).astype(jnp.bfloat16)
    x3n, x4n, x5n = to_nhwc(x3), to_nhwc(x4), to_nhwc(x5)

    w1, s1, b1 = params['conv1']
    p5 = conv1x1_bn_silu(x5n, w1, s1, b1)                          # (N, H5, W5, Ch)

    # p4 = conv2(cat([up(p5), x4], 1)) — concat fused into the conv kernel.
    w2, s2, b2 = params['conv2']
    p4 = conv3x3_s1_bn_silu([_up2_nearest(p5), x4n], w2, s2, b2)   # (N, 2H5, 2W5, Ch)

    # p3 = conv3(p4)  (3x3, stride 2)
    w3, s3, b3 = params['conv3']
    p3 = conv3x3_s2_bn_silu(p4, w3, s3, b3)                        # (N, H5, W5, Ch)

    # p3 = conv4(cat([p3, x3], 1)) — concat fused.
    w4, s4, b4 = params['conv4']
    p3 = conv3x3_s1_bn_silu([p3, x3n], w4, s4, b4)                 # (N, H5, W5, Ch)

    # output_conv(cat([p5, p4, p3], 1)) — concat fused.
    # TODO(synk): the reference forward's final torch.cat mixes spatial sizes (p4 is
    # 2x p5/p3) and cannot execute as written in PyTorch; we nearest-upsample p5 and
    # p3 to p4's resolution (using the module's own `up` op) so the concat is defined.
    w5, s5, b5 = params['output_conv']
    out = conv3x3_s1_bn_silu([_up2_nearest(p5), p4, _up2_nearest(p3)], w5, s5, b5)

    return jnp.transpose(out.astype(jnp.float32), (0, 3, 1, 2))    # NHWC -> NCHW


# ---------------------------------------------------------------------------
# Deterministic parameters (BatchNorm folded to scale/bias, eval mode)
# ---------------------------------------------------------------------------
def make_params(key, hidden, c5):
    eps = 1e-5

    def bn_fold(k, c):
        kg, kb, km, kv = jax.random.split(k, 4)
        gamma = jax.random.uniform(kg, (c,), jnp.float32, minval=0.5, maxval=1.5)
        beta = jax.random.normal(kb, (c,), jnp.float32) * 0.1
        mean = jax.random.normal(km, (c,), jnp.float32) * 0.1
        var = jax.random.uniform(kv, (c,), jnp.float32, minval=0.5, maxval=1.5)
        scale = gamma / jnp.sqrt(var + eps)
        return scale, beta - mean * scale

    def w3x3(k, cin, cout):
        return jax.random.normal(k, (3, 3, cin, cout), jnp.float32) * (2.0 / (9 * cin)) ** 0.5

    ks = jax.random.split(key, 10)
    return {
        'conv1': (jax.random.normal(ks[0], (c5, hidden), jnp.float32) * (2.0 / c5) ** 0.5,)
                 + bn_fold(ks[1], hidden),
        'conv2': (w3x3(ks[2], 2 * hidden, hidden),) + bn_fold(ks[3], hidden),
        'conv3': (w3x3(ks[4], hidden, hidden),) + bn_fold(ks[5], hidden),
        'conv4': (w3x3(ks[6], 2 * hidden, hidden),) + bn_fold(ks[7], hidden),
        'output_conv': (w3x3(ks[8], 3 * hidden, hidden),) + bn_fold(ks[9], hidden),
    }


# ---------------------------------------------------------------------------
# Pure-JAX reference (same math & bf16 casting points, XLA convs)
# ---------------------------------------------------------------------------
def reference_forward(features_nchw, params):
    x3, x4, x5 = features_nchw
    to_nhwc = lambda t: jnp.transpose(t, (0, 2, 3, 1)).astype(jnp.bfloat16)
    x3n, x4n, x5n = to_nhwc(x3), to_nhwc(x4), to_nhwc(x5)

    def cbs(x, w, s, b, stride=1, pad=1):
        y = lax.conv_general_dilated(
            x, w.astype(jnp.bfloat16), (stride, stride), ((pad, pad), (pad, pad)),
            dimension_numbers=('NHWC', 'HWIO', 'NHWC'),
            preferred_element_type=jnp.float32)
        y = y * s + b
        y = y * jax.nn.sigmoid(y)
        return y.astype(jnp.bfloat16)

    up = lambda t: jnp.repeat(jnp.repeat(t, 2, axis=1), 2, axis=2)

    w1, s1, b1 = params['conv1']
    p5 = cbs(x5n, w1.reshape(1, 1, *w1.shape), s1, b1, stride=1, pad=0)
    p4 = cbs(jnp.concatenate([up(p5), x4n], axis=-1), *params['conv2'])
    p3 = cbs(p4, *params['conv3'], stride=2)
    p3 = cbs(jnp.concatenate([p3, x3n], axis=-1), *params['conv4'])
    out = cbs(jnp.concatenate([up(p5), p4, up(p3)], axis=-1), *params['output_conv'])
    return jnp.transpose(out.astype(jnp.float32), (0, 3, 1, 2))


if __name__ == "__main__":
    key = jax.random.PRNGKey(0)
    k3, k4, k5, kp = jax.random.split(key, 4)

    # Small demo shapes consistent with the module's forward:
    #   hidden = in_channels[0]; x5 carries in_channels[2] channels; the concats in
    #   the forward require x4 / x3 to carry `hidden` channels.  hidden=128 keeps the
    #   channel (lane) axis dense on TPU.
    N, hidden, c5, H5, W5 = 2, 128, 256, 8, 8
    x5 = jax.random.normal(k5, (N, c5, H5, W5), jnp.float32)            # NCHW like PyTorch
    x4 = jax.random.normal(k4, (N, hidden, 2 * H5, 2 * W5), jnp.float32)
    x3 = jax.random.normal(k3, (N, hidden, H5, W5), jnp.float32)
    params = make_params(kp, hidden=hidden, c5=c5)

    out = jax.block_until_ready(panet_forward((x3, x4, x5), params))
    ref = jax.block_until_ready(reference_forward((x3, x4, x5), params))

    assert out.shape == (N, hidden, 2 * H5, 2 * W5), out.shape
    max_err = float(jnp.max(jnp.abs(out - ref)))
    assert jnp.allclose(out, ref, atol=3e-2, rtol=3e-2), (
        f"mismatch vs JAX reference (max |err| = {max_err})")
    print("KERNEL_OK")
</pallas_src>

<mosaic_0001>
module attributes {stable_mosaic.version = 11 : i64} {
  func.func @_conv1x1_bn_silu_kernel(%arg0: i32, %arg1: memref<1x8x8x256xbf16, #tpu.memory_space<vmem>>, %arg2: memref<256x128xbf16, #tpu.memory_space<vmem>>, %arg3: memref<1x128xf32, #tpu.memory_space<vmem>>, %arg4: memref<1x128xf32, #tpu.memory_space<vmem>>, %arg5: memref<1x8x8x128xbf16, #tpu.memory_space<vmem>>) attributes {dimension_semantics = [#tpu.dimension_semantics<parallel>], iteration_bounds = array<i64: 2>, scalar_prefetch = 0 : i64, scratch_operands = 0 : i64, tpu.core_type = #tpu.core_type<tc>, window_params = [{transform_indices = @transform_0, window_bounds = array<i64: 1, 8, 8, 256>}, {pipeline_mode = #tpu.pipeline_mode<synchronous>, transform_indices = @transform_1, window_bounds = array<i64: 256, 128>}, {pipeline_mode = #tpu.pipeline_mode<synchronous>, transform_indices = @transform_2, window_bounds = array<i64: 1, 128>}, {pipeline_mode = #tpu.pipeline_mode<synchronous>, transform_indices = @transform_3, window_bounds = array<i64: 1, 128>}, {transform_indices = @transform_4, window_bounds = array<i64: 1, 8, 8, 128>}]} {
    %c0 = arith.constant 0 : index
    %c0_0 = arith.constant 0 : index
    %c0_1 = arith.constant 0 : index
    %c0_2 = arith.constant 0 : index
    %0 = vector.load %arg1[%c0, %c0_0, %c0_1, %c0_2] : memref<1x8x8x256xbf16, #tpu.memory_space<vmem>>, vector<1x8x8x256xbf16>
    %1 = vector.shape_cast %0 : vector<1x8x8x256xbf16> to vector<64x256xbf16>
    %c0_3 = arith.constant 0 : index
    %c0_4 = arith.constant 0 : index
    %2 = vector.load %arg2[%c0_3, %c0_4] : memref<256x128xbf16, #tpu.memory_space<vmem>>, vector<256x128xbf16>
    %cst = arith.constant dense<0.000000e+00> : vector<64x128xf32>
    %3 = tpu.matmul %1, %2, %cst {dimension_numbers = #tpu.dot_dimension_numbers<[1], [0], [0], [1], [0, 0, 1, 1], [], []>} : vector<64x256xbf16>, vector<256x128xbf16>, vector<64x128xf32> -> vector<64x128xf32>
    %c0_5 = arith.constant 0 : index
    %c0_6 = arith.constant 0 : index
    %4 = vector.load %arg3[%c0_5, %c0_6] : memref<1x128xf32, #tpu.memory_space<vmem>>, vector<1x128xf32>
    %5 = vector.broadcast %4 : vector<1x128xf32> to vector<64x128xf32>
    %6 = arith.mulf %3, %5 : vector<64x128xf32>
    %c0_7 = arith.constant 0 : index
    %c0_8 = arith.constant 0 : index
    %7 = vector.load %arg4[%c0_7, %c0_8] : memref<1x128xf32, #tpu.memory_space<vmem>>, vector<1x128xf32>
    %8 = vector.broadcast %7 : vector<1x128xf32> to vector<64x128xf32>
    %9 = arith.addf %6, %8 : vector<64x128xf32>
    %10 = arith.negf %9 : vector<64x128xf32>
    %11 = math.exp %10 : vector<64x128xf32>
    %cst_9 = arith.constant 1.000000e+00 : f32
    %12 = vector.broadcast %cst_9 : f32 to vector<64x128xf32>
    %13 = arith.addf %12, %11 : vector<64x128xf32>
    %14 = arith.divf %12, %13 : vector<64x128xf32>
    %15 = arith.mulf %9, %14 : vector<64x128xf32>
    %16 = vector.shape_cast %15 : vector<64x128xf32> to vector<1x8x8x128xf32>
    %17 = arith.truncf %16 : vector<1x8x8x128xf32> to vector<1x8x8x128xbf16>
    %c0_10 = arith.constant 0 : index
    %c0_11 = arith.constant 0 : index
    %c0_12 = arith.constant 0 : index
    %c0_13 = arith.constant 0 : index
    %18 = vector.load %arg5[%c0_10, %c0_11, %c0_12, %c0_13] : memref<1x8x8x128xbf16, #tpu.memory_space<vmem>>, vector<1x8x8x128xbf16>
    tpu.vector_store %arg5[%c0_10, %c0_11, %c0_12, %c0_13], %17 {strides = array<i32>} : memref<1x8x8x128xbf16, #tpu.memory_space<vmem>>, vector<1x8x8x128xbf16>,
    return
  }
  func.func @transform_0(%arg0: i32) -> (i32, i32, i32, i32) {
    %c0_i32 = arith.constant 0 : i32
    %c0_i32_0 = arith.constant 0 : i32
    %c0_i32_1 = arith.constant 0 : i32
    %c0_i32_2 = arith.constant 0 : i32
    return %arg0, %c0_i32, %c0_i32_0, %c0_i32_1 : i32, i32, i32, i32
  }
  func.func @transform_1(%arg0: i32) -> (i32, i32) {
    %c0_i32 = arith.constant 0 : i32
    %c0_i32_0 = arith.constant 0 : i32
    %c0_i32_1 = arith.constant 0 : i32
    return %c0_i32, %c0_i32_0 : i32, i32
  }
  func.func @transform_2(%arg0: i32) -> (i32, i32) {
    %c0_i32 = arith.constant 0 : i32
    %c0_i32_0 = arith.constant 0 : i32
    %c0_i32_1 = arith.constant 0 : i32
    return %c0_i32, %c0_i32_0 : i32, i32
  }
  func.func @transform_3(%arg0: i32) -> (i32, i32) {
    %c0_i32 = arith.constant 0 : i32
    %c0_i32_0 = arith.constant 0 : i32
    %c0_i32_1 = arith.constant 0 : i32
    return %c0_i32, %c0_i32_0 : i32, i32
  }
  func.func @transform_4(%arg0: i32) -> (i32, i32, i32, i32) {
    %c0_i32 = arith.constant 0 : i32
    %c0_i32_0 = arith.constant 0 : i32
    %c0_i32_1 = arith.constant 0 : i32
    %c0_i32_2 = arith.constant 0 : i32
    return %arg0, %c0_i32, %c0_i32_0, %c0_i32_1 : i32, i32, i32, i32
  }
}

</mosaic_0001>

<bundles_post_ra>
// kernel: tpu_custom_call.1
= control target key start
LH: loop header
LB: loop body
LE: loop exit
PB: predicated region body
PF: predicated region fallthrough
CT: control target
= control target key end

     0   :  { %9 = vsyncpa [#allocation3], 0  ;;  %s1286_s0 = inlined_call_operand.hbm [shape: bf16[2,8,8,256], index: 0, kind: input, shape index: {}]   ;;  %s1287_s1 = inlined_call_operand.hbm [shape: bf16[256,128], index: 1, kind: input, shape index: {}]   ;;  %s1288_s2 = inlined_call_operand.vmem [shape: f32[1,128], index: 2, kind: input, shape index: {}]   ;;  %s1289_s3 = inlined_call_operand.vmem [shape: f32[1,128], index: 3, kind: input, shape index: {}]   ;;  %s1290_s4 = inlined_call_operand.hbm [shape: bf16[2,8,8,128], index: 4, kind: output, shape index: {}]  }
   0x1   :  { %11 = vsyncpa [#allocation3 + $0x1], 0 }
   0x2   :  { %12 = vsyncpa [#allocation6], 0 }
   0x3   :  { %13 = vsyncpa [#allocation4], 0 }
   0x4   :  { %15 = vsyncpa [#allocation4 + $0x1], 0  ;;  %s1084_s15 = smov 0   ;;  %s1086_s16 = smov 0  }
   0x5   :  { %s1088_s17 = smov 0   ;;  %s1090_s18 = smov 0  }
   0x6 LB: > { %s1105_s19 = sadd.s32 4294967295, %s1048_s18   ;;  %s672_s20 = sadd.s32 4294967294, %s1048_s18   ;;  %s1048_s18 = sphi %s1090_s18, %s1312_s18   ;;  %s1044_s17 = sphi %s1088_s17, %s1311_s17   ;;  %s1040_s16 = sphi %s1086_s16, %s1310_s16   ;;  %s1036_s15 = sphi %s1084_s15, %s1309_s15  }
   0x7   : > { %p41_p0 = scmp.ne.s32.totalorder %s1040_s16, %s1036_s15  ;;  %p1291_p1 = scmp.eq.s32.totalorder %s1105_s19, 0 }
   0x8   : > { %p134_p3 = scmp.eq.s32.totalorder %s672_s20, 1  ;;  %p673_p5 = scmp.ge.s32.totalorder %s1048_s18, 1 }
   0x9   : > { %p1114_p4 = por %p1291_p1, %p41_p0  ;;  %p141_p7 = scmp.lt.s32.totalorder %s1048_s18, 3 }
   0xa   : > { %p1119_p6 = por %p134_p3, %p41_p0  ;;  %s1050_s24 = smov [#allocation5]  }
   0xb   : > { %s1295_s21 = scalar_select %p1114_p4, 1, 0 }
   0xc   : > { %s1296_s22 = scalar_select %p1119_p6, 1, 0 }
   0xd   : > { %p1124_p8 = pnand %p673_p5, %p141_p7  ;;  %s153_s25 = sshll.u32 %s1050_s24, 4  ;;  %s154_s25 = int_to_ptr.vmem [resolvable:$true] %s153_s25 }
   0xe   : > { %s1138_s27 = sadd.s32 1, %s1048_s18   ;;  %s28_s28 = sadd.s32 1, %s1044_s17 }
   0xf   : > { %s1297_s23 = scalar_select %p1124_p8, 1, 0 }
  0x10   : > { %p811_p9 = pneg %p1124_p8  ;;  %s25_s29 = ssub.s32 %s1048_s18, %s1138_s27 }
  0x11   : > { %s937_s30 = scalar_lea.vmem %s154_s25, 2048  ;;  %p945_p5 = scmp.lt.s32.totalorder %s154_s25, %s154_s25 }
  0x12   : > { %p1133_p11 = pnand %p811_p9, %p1291_p1  ;;  %p938_p13 = scmp.ne.s32.totalorder %s154_s25, %s937_s30 }
  0x13   : > { %p946_p7 = scmp.lt.s32.totalorder %s937_s30, %s937_s30 }
  0x14   : > { %p928_p12 = pneg %p1133_p11 }
  0x15   : > { %p947_p10 = por %p946_p7, %p945_p5 }
  0x16   : > { %p940_p0 = pnand %p938_p13, %p928_p12 }
  0x18   : > { %p941_p3 = pneg %p940_p0 }
  0x1a   : > { %p948_p2 = pnand %p947_p10, %p941_p3 }
  0x1c   : > { %951 = shalt.err (!%p948_p2)
}
  0x1d   : > { %s1051_s5 = smov 64   ;;  %s1052_s6 = smov 4  }
  0x1e   : > { %814 = dma.hbm_to_vmem [thread:$0]  (!%p1133_p11), %s1287_s1, 2048, %s154_s25, [#allocation6], %s1051_s5, %s1051_s5, %s1052_s6  }
  0x1f   : > { %p26_p9 = scmp.eq.s32.totalorder %s25_s29, 0  ;;  %p35_p12 = scmp.ne.s32.totalorder %s1044_s17, %s1040_s16 }
  0x20   : > { %p36_p10 = scmp.eq.s32.totalorder %s1048_s18, 0  ;;  %p824_p2 = scmp.lt.s32.totalorder %s1048_s18, 2 }
  0x21   : > { %s1155_s9 = scalar_select %p26_p9, %s1044_s17, %s28_s28  }
  0x22   : > { %p37_p13 = por %p36_p10, %p35_p12  ;;  %p1299_p0 = scmp.eq.s32.totalorder %s1105_s19, 1 }
  0x23   : > { %s173_s11 = sand.u32 1, %s1044_s17   ;;  %s722_s12 = sshll.u32 %s1048_s18, 10 }
  0x24   : > { %p1159_p3 = por %p1299_p0, %p35_p12  ;;  %s676_s13 = sshll.u32 %s173_s11, 6 }
  0x25   : > { %s1168_s24 = scalar_lea.hbm %s1286_s0, %s722_s12  ;;  %s177_s25 = scalar_lea.vmem [#allocation2], %s676_s13 }
  0x26   : > { %s1300_s10 = scalar_select %p1159_p3, 1, 0 }
  0x27   : > { %s184_s26 = sshll.u32 %s177_s25, 4  ;;  %p1170_p11 = pnand %p824_p2, %p37_p13  ;;  %s1174_s26 = int_to_ptr.vmem [resolvable:$true] %s184_s26 }
  0x28   : > { %s1176_s29 = scalar_lea.sflag [#allocation3], %s173_s11  ;;  %s952_s30 = scalar_lea.hbm %s1168_s24, 1024 }
  0x29   : > { %p953_p5 = scmp.ne.s32.totalorder %s1168_s24, %s952_s30  ;;  %p954_p7 = pneg %p1170_p11 }
  0x2a   : > { %s957_s7 = scalar_lea.hbm %s1286_s0, 2048  ;;  %p958_p10 = scmp.lt.s32.totalorder %s1168_s24, %s1286_s0 }
  0x2b   : > { %p955_p9 = pnand %p954_p7, %p953_p5  ;;  %p959_p2 = scmp.lt.s32.totalorder %s957_s7, %s952_s30 }
  0x2d   : > { %p956_p12 = pneg %p955_p9  ;;  %p960_p13 = por %p959_p2, %p958_p10 }
  0x2f   : > { %p961_p0 = pnand %p960_p13, %p956_p12 }
  0x31   : > { %964 = shalt.err (!%p961_p0)
}
  0x32   : > { %s965_s11 = scalar_lea.vmem %s1174_s26, 1024  ;;  %s1053_s13 = smov [#allocation2]  }
  0x33   : > { %p966_p1 = scmp.ne.s32.totalorder %s1174_s26, %s965_s11  ;;  %s970_s14 = sshll.u32 %s1053_s13, 4  ;;  %s971_s14 = int_to_ptr.vmem [resolvable:$false] %s970_s14 }
  0x34   : > { %s972_s20 = scalar_lea.vmem %s971_s14, 2048  ;;  %p973_p9 = scmp.lt.s32.totalorder %s1174_s26, %s971_s14 }
  0x35   : > { %p968_p6 = pnand %p966_p1, %p954_p7  ;;  %p974_p3 = scmp.lt.s32.totalorder %s972_s20, %s965_s11 }
  0x37   : > { %p969_p5 = pneg %p968_p6  ;;  %p975_p4 = por %p974_p3, %p973_p9 }
  0x39   : > { %p976_p8 = pnand %p975_p4, %p969_p5 }
  0x3b   : > { %979 = shalt.err (!%p976_p8)
}
  0x3c   : > { %s1054_s25 = smov 128   ;;  %s1055_s30 = smov 8  }
  0x3d   : > { %818 = dma.hbm_to_vmem [thread:$0]  (!%p1170_p11), %s1168_s24, 1024, %s1174_s26, %s1176_s29, %s1054_s25, %s1054_s25, %s1055_s30  }
  0x3e   : > { %p1302_p1 = scmp.ne.s32.totalorder %s1297_s23, 0 }
  0x3f   : > { %s1200_s5 = sand.u32 (!%p1302_p1), 1, %s1040_s16   ;;  %p1303_p4 = scmp.ne.s32.totalorder (!%p1302_p1), %s1295_s21, 0 }
  0x40   : > { %196 = sbr.rel (%p1302_p1) target bundleno = 370 (0x172), region = 36  ;;  %s680_s6 = sshll.u32 (!%p1302_p1), %s1200_s5, 6 }
  0x41   : > { %s199_s7 = scalar_lea.sflag (!%p1302_p1), [#allocation3], %s1200_s5  ;;  %s1204_s8 = scalar_lea.vmem (!%p1302_p1), [#allocation2], %s680_s6 }
  0x45   : > { %1023 = dma.done.wait (%p1303_p4), %s199_s7, 1024  }
  0x46   : > { %1025 = vsyncadd (%p1303_p4), %s199_s7, 4294966272  ;;  %p1304_p6 = scmp.eq.s32.totalorder %s1105_s19, 0 }
  0x48   : > { %1027 = dma.done.wait (%p1304_p6), [#allocation6], 2048   ;;  %p1305_p8 = pmov %p1304_p6 }
  0x49   : > { %v866_v0 = vld [vmem:[#allocation5 + $0x78] sm:$0xff]   ;;  %v868_v2 = vld [vmem:[#allocation5 + $0x70] sm:$0xff]   ;;  %v870_v4 = vld [vmem:[#allocation5 + $0x68] sm:$0xff]   ;;  %s682_s28 = sshll.u32 %s1200_s5, 5  ;;  %s723_s12 = sshll.u32 %s1105_s19, 9 }
  0x4a   : > { %1029 = vsyncadd (%p1305_p8), [#allocation6], 4294965248  ;;  %v867_v1 = vld [vmem:[#allocation5 + $0x38] sm:$0xff]   ;;  %747 = vmatprep.subr.bf16.mxu0 %v866_v0  ;;  %787 = vmatprep.subr.bf16.mxu1 %v866_v0  ;;  %v869_v3 = vld [vmem:[#allocation5 + $0x30] sm:$0xff]   ;;  %s230_s29 = scalar_lea.vmem [#allocation7], %s682_s28  ;;  %s1241_s20 = scalar_lea.hbm %s1290_s4, %s723_s12 }
  0x4b   : > { %748 = vmatpush3.bf16.msra.mxu0 %v867_v1  ;;  %795 = vmatpush3.bf16.msra.mxu1 %v867_v1  ;;  %v871_v5 = vld [vmem:[#allocation5 + $0x28] sm:$0xff]   ;;  %v872_v6 = vld [vmem:[#allocation5 + $0x60] sm:$0xff]   ;;  %v874_v8 = vld [vmem:[#allocation5 + $0x58] sm:$0xff]   ;;  %s589_s11 = sshll.u32 %s230_s29, 4  ;;  %s576_s19 = scalar_lea.sflag [#allocation4], %s1200_s5  ;;  %s1243_s11 = int_to_ptr.vmem [resolvable:$true] %s589_s11 }
  0x4c   : > { %749 = vmatprep.subr.bf16.mxu0 %v868_v2  ;;  %788 = vmatprep.subr.bf16.mxu1 %v868_v2  ;;  %v873_v7 = vld [vmem:[#allocation5 + $0x20] sm:$0xff]   ;;  %v875_v9 = vld [vmem:[#allocation5 + $0x18] sm:$0xff]   ;;  %v876_v10 = vld [vmem:[#allocation5 + $0x50] sm:$0xff]   ;;  %s980_s25 = scalar_lea.vmem %s1243_s11, 512  ;;  %p1306_p11 = scmp.ne.s32.totalorder %s1300_s10, 0 }
  0x4d   : > { %v884_v11 = vld [vmem:[%s1204_s8 + $0x4] ss:$8 sps:$4 sm:$0xff]   ;;  %v877_v13 = vld [vmem:[#allocation5 + $0x10] sm:$0xff]   ;;  %v882_v18 = vld [vmem:[%s1204_s8] ss:$8 sps:$4 sm:$0xff]   ;;  %p981_p3 = scmp.ne.s32.totalorder %s1243_s11, %s980_s25  ;;  %s1056_s30 = smov [#allocation7]  }
  0x4e   : > { %v887_v12 = vld [vmem:[%s1204_s8 + $0x24] ss:$8 sps:$4 sm:$0xff]   ;;  %440 = vmatprep.mubr.bf16.mxu0 %v884_v11  ;;  %v885_v19 = vld [vmem:[%s1204_s8 + $0x20] ss:$8 sps:$4 sm:$0xff]   ;;  %v888_v20 = vld [vmem:[%s1204_s8 + $0x14] ss:$8 sps:$4 sm:$0xff]  }
  0x4f   : > { %750 = vmatpush3.bf16.msra.mxu0 %v869_v3  ;;  %796 = vmatpush3.bf16.msra.mxu1 %v869_v3  ;;  %v878_v14 = vld [vmem:[#allocation5 + $0x48] sm:$0xff]   ;;  %v880_v16 = vld [vmem:[#allocation5 + $0x40] sm:$0xff]   ;;  %v890_v21 = vld [vmem:[%s1204_s8 + $0x34] ss:$8 sps:$4 sm:$0xff]   ;;  %p982_p7 = pnand %p981_p3, %p1306_p11  ;;  %s984_s6 = sshll.u32 %s1056_s30, 4  ;;  %s985_s6 = int_to_ptr.vmem [resolvable:$false] %s984_s6 }
  0x50   : > { %751 = vmatprep.subr.bf16.mxu0 %v870_v4  ;;  %789 = vmatprep.subr.bf16.mxu1 %v870_v4  ;;  %v879_v15 = vld [vmem:[#allocation5 + $0x8] sm:$0xff]   ;;  %v881_v17 = vld [vmem:[#allocation5] sm:$0xff]   ;;  %v892_v22 = vld [vmem:[%s1204_s8 + $0x10] ss:$8 sps:$4 sm:$0xff]   ;;  %s986_s7 = scalar_lea.vmem %s985_s6, 1024  ;;  %p987_p10 = scmp.lt.s32.totalorder %s1243_s11, %s985_s6 }
  0x51   : > { %456 = vmatprep.mubr.bf16.mxu1 %v887_v12  ;;  %v893_v23 = vld [vmem:[%s1204_s8 + $0x30] ss:$8 sps:$4 sm:$0xff]   ;;  %v707_v27 = vld [vmem:[%s1288_s2] ss:$0 sm:$0xff]  ;;  %p983_p12 = pneg %p982_p7  ;;  %p988_p2 = scmp.lt.s32.totalorder %s986_s7, %s980_s25 }
  0x52   : > { %v708_v31 = vld [vmem:[%s1289_s3] ss:$0 sm:$0xff] }
  0x53   : > { %752 = vmatpush3.bf16.msra.mxu0 %v871_v5  ;;  %797 = vmatpush3.bf16.msra.mxu1 %v871_v5  ;;  %p989_p13 = por %p988_p2, %p987_p10 }
  0x54   : > { %753 = vmatprep.subr.bf16.mxu0 %v872_v6  ;;  %790 = vmatprep.subr.bf16.mxu1 %v872_v6 }
  0x55   : > { %p990_p0 = pnand %p989_p13, %p983_p12 }
  0x57   : > { %754 = vmatpush3.bf16.msra.mxu0 %v873_v7  ;;  %798 = vmatpush3.bf16.msra.mxu1 %v873_v7 }
  0x58   : > { %755 = vmatprep.subr.bf16.mxu0 %v874_v8  ;;  %791 = vmatprep.subr.bf16.mxu1 %v874_v8 }
  0x5b   : > { %756 = vmatpush3.bf16.msra.mxu0 %v875_v9  ;;  %799 = vmatpush3.bf16.msra.mxu1 %v875_v9 }
  0x5c   : > { %757 = vmatprep.subr.bf16.mxu0 %v876_v10  ;;  %792 = vmatprep.subr.bf16.mxu1 %v876_v10 }
  0x5f   : > { %758 = vmatpush3.bf16.msra.mxu0 %v877_v13  ;;  %800 = vmatpush3.bf16.msra.mxu1 %v877_v13 }
  0x60   : > { %759 = vmatprep.subr.bf16.mxu0 %v878_v14  ;;  %793 = vmatprep.subr.bf16.mxu1 %v878_v14 }
  0x63   : > { %760 = vmatpush3.bf16.msra.mxu0 %v879_v15  ;;  %801 = vmatpush3.bf16.msra.mxu1 %v879_v15 }
  0x64   : > { %761 = vmatprep.subr.bf16.mxu0 %v880_v16  ;;  %794 = vmatprep.subr.bf16.mxu1 %v880_v16 }
  0x67   : > { %762 = vmatpush3.bf16.msra.mxu0 %v881_v17  ;;  %802 = vmatpush3.bf16.msra.mxu1 %v881_v17 }
  0x6a   : > { %441 = vmatmul.mubr.bf16.vlgmr.msra.gmra.mxu0 %v882_v18  ;;  %457 = vmatmul.mubr.bf16.vlgmr.msra.gmra.mxu1 %v885_v19 }
  0x6b   : > { %448 = vmatprep.mubr.bf16.mxu0 %v888_v20  ;;  %464 = vmatprep.mubr.bf16.mxu1 %v890_v21 }
  0x72   : > { %449 = vmatmul.mubr.bf16.gmra.mxu0 %v892_v22  ;;  %465 = vmatmul.mubr.bf16.gmra.mxu1 %v893_v23 }
 0x12a   : > { %v763_v24 = vpop.f32.mrf.mxu0  ;;  %v775_v25 = vpop.f32.mrf.mxu1 }
 0x12c   : > { %v764_v26 = vpop.f32.mrf.mxu0  ;;  %v776_v28 = vpop.f32.mrf.mxu1 }
 0x12d   : > { %v765_v29 = vadd.f32 %v764_v26, %v763_v24  ;;  %v777_v30 = vadd.f32 %v776_v28, %v775_v25 }
 0x12e   : > { %v766_v32 = vpop.f32.mrf.mxu0  ;;  %v778_v33 = vpop.f32.mrf.mxu1 }
 0x12f   : > { %v480_v34 = vmul.f32 %v765_v29, %v707_v27  ;;  %v484_v35 = vmul.f32 %v777_v30, %v707_v27 }
 0x130   : > { %v767_v36 = vpop.f32.mrf.mxu0  ;;  %v779_v37 = vpop.f32.mrf.mxu1 }
 0x131   : > { %v1228_v38 = vadd.f32 %v708_v31, %v480_v34  ;;  %v1230_v39 = vadd.f32 %v708_v31, %v484_v35  ;;  %v768_v40 = vadd.f32 %v767_v36, %v766_v32  ;;  %v780_v41 = vadd.f32 %v779_v37, %v778_v33 }
 0x132   : > { %v769_v42 = vpop.f32.mrf.mxu0  ;;  %v781_v43 = vpop.f32.mrf.mxu1 }
 0x133   : > { %v709_v44 = vmul.f32 -1.442695, %v1228_v38  ;;  %v713_v45 = vmul.f32 -1.442695, %v1230_v39  ;;  %v481_v46 = vmul.f32 %v768_v40, %v707_v27  ;;  %v485_v47 = vmul.f32 %v780_v41, %v707_v27 }
 0x134   : > { %v770_v48 = vpop.f32.mrf.mxu0  ;;  %v782_v49 = vpop.f32.mrf.mxu1 }
 0x135   : > { %894 = vpow2.f32 %v709_v44  ;;  %v496_v50 = vadd.f32 %v708_v31, %v481_v46  ;;  %v500_v51 = vadd.f32 %v708_v31, %v485_v47  ;;  %v771_v52 = vadd.f32 %v770_v48, %v769_v42 }
 0x136   : > { %896 = vpow2.f32 %v713_v45  ;;  %v783_v53 = vadd.f32 %v782_v49, %v781_v43  ;;  %v772_v54 = vpop.f32.mrf.mxu0  ;;  %v784_v55 = vpop.f32.mrf.mxu1 }
 0x137   : > { %v710_v56 = vmul.f32 -1.442695, %v496_v50  ;;  %v714_v57 = vmul.f32 -1.442695, %v500_v51  ;;  %v482_v58 = vmul.f32 %v771_v52, %v707_v27 }
 0x138   : > { %v486_v59 = vmul.f32 %v783_v53, %v707_v27  ;;  %v773_v60 = vpop.f32.mrf.mxu0  ;;  %v785_v61 = vpop.f32.mrf.mxu1 }
 0x139   : > { %898 = vpow2.f32 %v710_v56  ;;  %v497_v62 = vadd.f32 %v708_v31, %v482_v58  ;;  %v774_v63 = vadd.f32 %v773_v60, %v772_v54  ;;  %v786_v0 = vadd.f32 %v785_v61, %v784_v55 }
 0x13a   : > { %900 = vpow2.f32 %v714_v57  ;;  %v501_v1 = vadd.f32 %v708_v31, %v486_v59 }
 0x13b   : > { %v711_v2 = vmul.f32 -1.442695, %v497_v62  ;;  %v483_v3 = vmul.f32 %v774_v63, %v707_v27  ;;  %v487_v4 = vmul.f32 %v786_v0, %v707_v27 }
 0x13c   : > { %v715_v5 = vmul.f32 -1.442695, %v501_v1 }
 0x13d   : > { %902 = vpow2.f32 %v711_v2  ;;  %v498_v6 = vadd.f32 %v708_v31, %v483_v3  ;;  %v502_v7 = vadd.f32 %v708_v31, %v487_v4 }
 0x13e   : > { %904 = vpow2.f32 %v715_v5 }
 0x13f   : > { %v712_v8 = vmul.f32 -1.442695, %v498_v6  ;;  %v716_v9 = vmul.f32 -1.442695, %v502_v7 }
 0x141   : > { %906 = vpow2.f32 %v712_v8 }
 0x142   : > { %v895_v10 = vpop.eup %894  ;;  %908 = vpow2.f32 %v716_v9 }
 0x143   : > { %v897_v11 = vpop.eup %896  ;;  %v527_v12 = vadd.f32 1.0, %v895_v10 }
 0x144   : > { %v531_v13 = vadd.f32 1.0, %v897_v11 }
 0x145   : > { %910 = vrcp.f32 %v527_v12 }
 0x146   : > { %v899_v14 = vpop.eup %898  ;;  %912 = vrcp.f32 %v531_v13 }
 0x147   : > { %v901_v15 = vpop.eup %900  ;;  %v528_v16 = vadd.f32 1.0, %v899_v14 }
 0x148   : > { %v532_v17 = vadd.f32 1.0, %v901_v15 }
 0x149   : > { %914 = vrcp.f32 %v528_v16 }
 0x14a   : > { %v903_v18 = vpop.eup %902  ;;  %916 = vrcp.f32 %v532_v17 }
 0x14b   : > { %v905_v19 = vpop.eup %904  ;;  %v529_v20 = vadd.f32 1.0, %v903_v18 }
 0x14c   : > { %v533_v21 = vadd.f32 1.0, %v905_v19 }
 0x14d   : > { %918 = vrcp.f32 %v529_v20 }
 0x14e   : > { %v907_v22 = vpop.eup %906  ;;  %920 = vrcp.f32 %v533_v21 }
 0x14f   : > { %v909_v23 = vpop.eup %908  ;;  %v530_v24 = vadd.f32 1.0, %v907_v22 }
 0x150   : > { %v534_v25 = vadd.f32 1.0, %v909_v23 }
 0x151   : > { %922 = vrcp.f32 %v530_v24 }
 0x152   : > { %924 = vrcp.f32 %v534_v25  ;;  %v911_v26 = vpop.eup %910 }
 0x153   : > { %v913_v27 = vpop.eup %912  ;;  %v551_v30 = vmul.f32 %v911_v26, %v1228_v38 }
 0x154   : > { %v555_v32 = vmul.f32 %v913_v27, %v1230_v39 }
 0x156   : > { %v915_v28 = vpop.eup %914 }
 0x157   : > { %v917_v29 = vpop.eup %916  ;;  %v552_v31 = vmul.f32 %v915_v28, %v496_v50 }
 0x158   : > { %v556_v33 = vmul.f32 %v917_v29, %v500_v51 }
 0x159   : > { %v727_v34 = vpack.c.bf16 %v552_v31, %v551_v30 }
 0x15a   : > { %v737_v35 = vpack.c.bf16 %v556_v33, %v555_v32  ;;  %v919_v36 = vpop.eup %918 }
 0x15b   : > { %728 = vst [vmem:[%s230_s29] sm:$0xff] %v727_v34   ;;  %v921_v37 = vpop.eup %920  ;;  %v553_v42 = vmul.f32 %v919_v36, %v497_v62 }
 0x15c   : > { %745 = vst [vmem:[%s230_s29 + $0x10] sm:$0xff] %v737_v35   ;;  %v557_v38 = vmul.f32 %v921_v37, %v501_v1 }
 0x15e   : > { %v923_v40 = vpop.eup %922 }
 0x15f   : > { %v925_v41 = vpop.eup %924  ;;  %v554_v43 = vmul.f32 %v923_v40, %v498_v6 }
 0x160   : > { %v558_v44 = vmul.f32 %v925_v41, %v502_v7 }
 0x161   : > { %v732_v45 = vpack.c.bf16 %v554_v43, %v553_v42 }
 0x162   : > { %v742_v39 = vpack.c.bf16 %v558_v44, %v557_v38 }
 0x163   : > { %744 = vst [vmem:[%s230_s29 + $0x8] sm:$0xff] %v732_v45  }
 0x164   : > { %746 = vst [vmem:[%s230_s29 + $0x18] sm:$0xff] %v742_v39  }
 0x165   : > { %993 = shalt.err (!%p990_p0)
}
 0x166   : > { %s994_s8 = scalar_lea.hbm %s1241_s20, 512  ;;  %s998_s24 = scalar_lea.hbm %s1290_s4, 1024 }
 0x167   : > { %p995_p5 = scmp.ne.s32.totalorder %s1241_s20, %s994_s8  ;;  %p999_p4 = scmp.lt.s32.totalorder %s1241_s20, %s1290_s4 }
 0x168   : > { %p1000_p6 = scmp.lt.s32.totalorder %s998_s24, %s994_s8 }
 0x169   : > { %p996_p9 = pnand %p995_p5, %p1306_p11 }
 0x16a   : > { %p1001_p8 = por %p1000_p6, %p999_p4 }
 0x16b   : > { %p997_p1 = pneg %p996_p9 }
 0x16d   : > { %p1002_p3 = pnand %p1001_p8, %p997_p1 }
 0x16f   : > { %1005 = shalt.err (!%p1002_p3)
}
 0x170   : > { %s1057_s29 = smov 64   ;;  %s1058_s12 = smov 4  }
 0x171   : > { %809 = dma.vmem_to_hbm [thread:$0]  (%p1306_p11), %s1243_s11, 512, %s1241_s20, %s576_s19, %s1057_s29, %s1057_s29, %s1058_s12  }
 0x172 PF: > { %s604_s13 = sand.u32 1, %s1036_s15   ;;  %p1307_p7 = scmp.ne.s32.totalorder %s1296_s22, 0 }
 0x173   : > { %p1308_p12 = scmp.ge.s32.totalorder %s1048_s18, 2  ;;  %s605_s14 = scalar_lea.sflag [#allocation4], %s604_s13 }
 0x175   : > { %p820_p10 = pnand %p1308_p12, %p1307_p7 }
 0x177   : > { %p821_p2 = pneg %p820_p10 }
 0x179   : > { %1031 = dma.done.wait (%p821_p2), %s605_s14, 512  }
 0x17a   : > { %1033 = vsyncadd (%p821_p2), %s605_s14, 4294966784  ;;  %p18_p13 = scmp.ge.s32.totalorder %s1138_s27, 4   ;;  %s1309_s15 = smov %s1040_s16 }
 0x17b   : > { %s1310_s16 = smov %s1044_s17  ;;  %s1311_s17 = smov %s1155_s9 }
 0x17c   : > { %s1312_s18 = smov %s1138_s27  ;;  %20 = sbr.rel (!%p18_p13) target bundleno = 6 (0x6), region = 85 }
 0x181   :  { %610 = vsyncpa [#allocation3], 1 }
 0x182   :  { %612 = vsyncpa [#allocation3 + $0x1], 1 }
 0x183   :  { %613 = vsyncpa [#allocation6], 1 }
 0x184   :  { %614 = vsyncpa [#allocation4], 1 }
 0x185   :  { %616 = vsyncpa [#allocation4 + $0x1], 1 }

</bundles_post_ra>
